<compile_context>
chip_gen: v7x
topology: tpu7x:2x2x1
jax: 0.10.0
libtpu: 0.0.40
codegen_flags: <defaults>
</compile_context>

<pallas_src>
import functools
import math

import jax
import jax.numpy as jnp
from jax import lax
from jax.experimental import pallas as pl
from jax.experimental.pallas import tpu as pltpu

EPS = 1e-5
SLOPE = 0.2


# ---------------- Pallas kernels (one grid step per batch element) ----------
# All kernels work channels-first: activations are (C, spatial) with the
# spatial dim on the lane axis; matmuls are W (Cout, K) @ patches (K, spatial).


def _in_lrelu(x, gamma, beta):
    # x: (C, S).  torch.std is unbiased (ddof=1); denominator is (std + eps).
    s = x.shape[1]
    mean = jnp.mean(x, axis=1, keepdims=True)
    xc = x - mean
    var = jnp.sum(xc * xc, axis=1, keepdims=True) * (1.0 / (s - 1))
    inv = pl.reciprocal(jnp.sqrt(var) + EPS, approx=False)   # (C,1), broadcast
    y = xc * (inv * gamma) + beta
    return jnp.where(y >= 0, y, SLOPE * y)


def in_lrelu_kernel(x_ref, g_ref, b_ref, o_ref):
    # x_ref: (1, Cin, HW); g_ref/b_ref: (Cin, 1); o_ref: (1, Cin, HW)
    o_ref[0] = _in_lrelu(x_ref[0], g_ref[...], b_ref[...])


def conv_pool_in_lrelu_kernel(p_ref, w_ref, b_ref, g_ref, be_ref, o_ref):
    # p_ref: (1, 9*Cin, HWo)  conv1 im2col patches, pre-summed over the 2x2
    #        pool window (pool linearity); w_ref: (Cin, 9*Cin) already * 0.25.
    # b/g/be: (Cin, 1); o_ref: (1, Cin, HWo)
    y = jnp.dot(w_ref[...], p_ref[0],
                preferred_element_type=jnp.float32) + b_ref[...]
    o_ref[0] = _in_lrelu(y, g_ref[...], be_ref[...])


def conv_residual_kernel(p_ref, w_ref, b_ref, o_ref):
    # Fused conv2 + shortcut:
    # p_ref: (1, 10*Cin, HWo) = [conv2 patches ; pooled-x] along channels
    # w_ref: (Cout, 10*Cin)   = [w2/sqrt2 | 0.25*wsc/sqrt2]
    # b_ref: (Cout, 1)        = b2/sqrt2
    o_ref[0] = jnp.dot(w_ref[...], p_ref[0],
                       preferred_element_type=jnp.float32) + b_ref[...]


# ---------------- JAX glue (layout only: pad / shift / window-sum) ----------


def _im2col3x3_cf(x):
    # (N, C, H, W) -> (N, 9*C, H, W); zero pad 1; tap-major (ky, kx), c minor.
    n, c, h, w = x.shape
    xp = jnp.pad(x, ((0, 0), (0, 0), (1, 1), (1, 1)))
    cols = [xp[:, :, ky:ky + h, kx:kx + w] for ky in range(3) for kx in range(3)]
    return jnp.concatenate(cols, axis=1)


def _pool_sum_cf(x):
    # (N, C, H, W) -> (N, C, (H/2)*(W/2)): SUM (not mean) of each 2x2 window.
    n, c, h, w = x.shape
    xs = x.reshape(n, c, h // 2, 2, w // 2, 2).sum(axis=(3, 5))
    return xs.reshape(n, c, (h // 2) * (w // 2))


def down_block_in(x_nchw, params):
    n, cin, h, w = x_nchw.shape
    cout = params["w2"].shape[0]
    ho, wo = h // 2, w // 2
    hw, hwo = h * w, ho * wo
    inv_sqrt2 = 1.0 / math.sqrt(2.0)

    x = x_nchw.astype(jnp.float32)
    x2 = x.reshape(n, cin, hw)                       # channels-first, flat HW

    # Per-channel IN params as (C, 1) columns.
    g1 = params["in1_w"].reshape(cin, 1)
    be1 = params["in1_b"].reshape(cin, 1)
    g2 = params["in2_w"].reshape(cin, 1)
    be2 = params["in2_b"].reshape(cin, 1)

    # Weight matrices, tap-major (ky,kx) / c-minor to match _im2col3x3_cf,
    # with the constant scales folded in.
    w1m = params["w1"].transpose(0, 2, 3, 1).reshape(cin, 9 * cin) * 0.25
    cb1 = params["b1"].reshape(cin, 1)               # bias survives the mean
    w2m = params["w2"].transpose(0, 2, 3, 1).reshape(cout, 9 * cin) * inv_sqrt2
    cb2 = params["b2"].reshape(cout, 1) * inv_sqrt2
    wscm = params["wsc"].reshape(cout, cin) * (0.25 * inv_sqrt2)
    w3m = jnp.concatenate([w2m, wscm], axis=1)       # (Cout, 10*Cin)

    cparams = pltpu.CompilerParams(dimension_semantics=("parallel",))

    def full(shape):
        zeros = (0,) * len(shape)
        return pl.BlockSpec(shape, lambda i, _z=zeros: _z)

    # Stage 1: a1 = leaky_relu(in1(x))                        (N, Cin, HW)
    a1 = pl.pallas_call(
        in_lrelu_kernel,
        out_shape=jax.ShapeDtypeStruct((n, cin, hw), jnp.float32),
        grid=(n,),
        in_specs=[pl.BlockSpec((1, cin, hw), lambda i: (i, 0, 0)),
                  full((cin, 1)), full((cin, 1))],
        out_specs=pl.BlockSpec((1, cin, hw), lambda i: (i, 0, 0)),
        compiler_params=cparams,
    )(x2, g1, be1)

    # Stage 2: a2 = leaky_relu(in2(avg_pool2d(conv1(a1), 2)))  (N, Cin, HWo)
    # avg_pool(conv) == (sum-of-window patches) @ (0.25*W1) + b1  (exact).
    patches1 = _pool_sum_cf(_im2col3x3_cf(a1.reshape(n, cin, h, w)))
    a2 = pl.pallas_call(
        conv_pool_in_lrelu_kernel,
        out_shape=jax.ShapeDtypeStruct((n, cin, hwo), jnp.float32),
        grid=(n,),
        in_specs=[pl.BlockSpec((1, 9 * cin, hwo), lambda i: (i, 0, 0)),
                  full((cin, 9 * cin)), full((cin, 1)),
                  full((cin, 1)), full((cin, 1))],
        out_specs=pl.BlockSpec((1, cin, hwo), lambda i: (i, 0, 0)),
        compiler_params=cparams,
    )(patches1, w1m, cb1, g2, be2)

    # Stage 3: out = (avg_pool2d(sc(x), 2) + conv2(a2) + b2) / sqrt(2)
    # Fused as one matmul: [w2/sqrt2 | 0.25*wsc/sqrt2] @ [patches2 ; pooled x].
    patches2 = _im2col3x3_cf(a2.reshape(n, cin, ho, wo)).reshape(n, 9 * cin, hwo)
    xpool = _pool_sum_cf(x.reshape(n, cin, h, w))                 # (N, Cin, HWo)
    pcat = jnp.concatenate([patches2, xpool], axis=1)             # (N, 10Cin, HWo)

    out2d = pl.pallas_call(
        conv_residual_kernel,
        out_shape=jax.ShapeDtypeStruct((n, cout, hwo), jnp.float32),
        grid=(n,),
        in_specs=[pl.BlockSpec((1, 10 * cin, hwo), lambda i: (i, 0, 0)),
                  full((cout, 10 * cin)), full((cout, 1))],
        out_specs=pl.BlockSpec((1, cout, hwo), lambda i: (i, 0, 0)),
        compiler_params=cparams,
    )(pcat, w3m, cb2)

    return out2d.reshape(n, cout, ho, wo)            # already NCHW


# ---------------- Pure-JAX reference (mirrors the PyTorch forward) ----------


def reference(x, P):
    def inorm(t, g, b):
        nn_, c, hh, ww = t.shape
        tr = t.reshape(nn_, c, hh * ww)
        mean = tr.mean(-1, keepdims=True)
        var = jnp.sum((tr - mean) ** 2, axis=-1, keepdims=True) / (hh * ww - 1)
        std = jnp.sqrt(var)
        out = (tr - mean) / (std + EPS) * g.reshape(1, c, 1) + b.reshape(1, c, 1)
        return out.reshape(nn_, c, hh, ww)

    def lrelu(t):
        return jnp.where(t >= 0, t, SLOPE * t)

    def conv(t, wgt, b=None, pad=1):
        y = lax.conv_general_dilated(t, wgt, (1, 1), [(pad, pad), (pad, pad)],
                                     dimension_numbers=("NCHW", "OIHW", "NCHW"))
        if b is not None:
            y = y + b.reshape(1, -1, 1, 1)
        return y

    def pool(t):
        nn_, c, hh, ww = t.shape
        return t.reshape(nn_, c, hh // 2, 2, ww // 2, 2).mean(axis=(3, 5))

    residual = pool(conv(x, P["wsc"], None, pad=0))
    out = conv(
        lrelu(inorm(pool(conv(lrelu(inorm(x, P["in1_w"], P["in1_b"])),
                              P["w1"], P["b1"])),
                    P["in2_w"], P["in2_b"])),
        P["w2"], P["b2"])
    return (residual + out) / math.sqrt(2.0)


if __name__ == "__main__":
    key = jax.random.PRNGKey(0)
    N, CIN, COUT, H, W = 2, 4, 8, 16, 16
    ks = jax.random.split(key, 6)
    params = {
        "w1": 0.2 * jax.random.normal(ks[0], (CIN, CIN, 3, 3), jnp.float32),
        "b1": 0.1 * jax.random.normal(ks[1], (CIN,), jnp.float32),
        "w2": 0.2 * jax.random.normal(ks[2], (COUT, CIN, 3, 3), jnp.float32),
        "b2": 0.1 * jax.random.normal(ks[3], (COUT,), jnp.float32),
        "wsc": 0.2 * jax.random.normal(ks[4], (COUT, CIN, 1, 1), jnp.float32),
        # InstanceNorm2d.__init__: weight = ones, bias = zeros
        "in1_w": jnp.ones((CIN,), jnp.float32),
        "in1_b": jnp.zeros((CIN,), jnp.float32),
        "in2_w": jnp.ones((CIN,), jnp.float32),
        "in2_b": jnp.zeros((CIN,), jnp.float32),
    }
    x = jax.random.normal(ks[5], (N, CIN, H, W), jnp.float32)

    out = jax.jit(down_block_in)(x, params)
    out = jax.block_until_ready(out)

    assert out.shape == (N, COUT, H // 2, W // 2), out.shape
    ref = reference(x, params)
    err = float(jnp.max(jnp.abs(out - ref)))
    if err > 2e-4:
        raise AssertionError(f"mismatch vs reference: max abs err = {err}")
    print("KERNEL_OK")
</pallas_src>

<mosaic_0001>
module attributes {stable_mosaic.version = 11 : i64} {
  func.func @in_lrelu_kernel(%arg0: i32, %arg1: memref<1x4x256xf32, #tpu.memory_space<vmem>>, %arg2: memref<4x1xf32, #tpu.memory_space<vmem>>, %arg3: memref<4x1xf32, #tpu.memory_space<vmem>>, %arg4: memref<1x4x256xf32, #tpu.memory_space<vmem>>) attributes {dimension_semantics = [#tpu.dimension_semantics<parallel>], iteration_bounds = array<i64: 2>, scalar_prefetch = 0 : i64, scratch_operands = 0 : i64, tpu.core_type = #tpu.core_type<tc>, window_params = [{transform_indices = @transform_0, window_bounds = array<i64: 1, 4, 256>}, {pipeline_mode = #tpu.pipeline_mode<synchronous>, transform_indices = @transform_1, window_bounds = array<i64: 4, 1>}, {pipeline_mode = #tpu.pipeline_mode<synchronous>, transform_indices = @transform_2, window_bounds = array<i64: 4, 1>}, {transform_indices = @transform_3, window_bounds = array<i64: 1, 4, 256>}]} {
    %c0 = arith.constant 0 : index
    %c0_0 = arith.constant 0 : index
    %c0_1 = arith.constant 0 : index
    %0 = vector.load %arg1[%c0, %c0_0, %c0_1] : memref<1x4x256xf32, #tpu.memory_space<vmem>>, vector<1x4x256xf32>
    %1 = vector.shape_cast %0 : vector<1x4x256xf32> to vector<4x256xf32>
    %c0_2 = arith.constant 0 : index
    %c0_3 = arith.constant 0 : index
    %2 = vector.load %arg2[%c0_2, %c0_3] : memref<4x1xf32, #tpu.memory_space<vmem>>, vector<4x1xf32>
    %c0_4 = arith.constant 0 : index
    %c0_5 = arith.constant 0 : index
    %3 = vector.load %arg3[%c0_4, %c0_5] : memref<4x1xf32, #tpu.memory_space<vmem>>, vector<4x1xf32>
    %cst = arith.constant dense<0.000000e+00> : vector<4xf32>
    %4 = vector.multi_reduction <add>, %1, %cst [1] : vector<4x256xf32> to vector<4xf32>
    %5 = vector.shape_cast %4 : vector<4xf32> to vector<4x1xf32>
    %cst_6 = arith.constant 2.560000e+02 : f32
    %6 = vector.broadcast %cst_6 : f32 to vector<4x1xf32>
    %7 = arith.divf %5, %6 : vector<4x1xf32>
    %8 = vector.broadcast %7 : vector<4x1xf32> to vector<4x256xf32>
    %9 = arith.subf %1, %8 : vector<4x256xf32>
    %10 = arith.mulf %9, %9 : vector<4x256xf32>
    %cst_7 = arith.constant dense<0.000000e+00> : vector<4xf32>
    %11 = vector.multi_reduction <add>, %10, %cst_7 [1] : vector<4x256xf32> to vector<4xf32>
    %12 = vector.shape_cast %11 : vector<4xf32> to vector<4x1xf32>
    %cst_8 = arith.constant 0.00392156886 : f32
    %13 = vector.broadcast %cst_8 : f32 to vector<4x1xf32>
    %14 = arith.mulf %12, %13 : vector<4x1xf32>
    %15 = math.sqrt %14 : vector<4x1xf32>
    %cst_9 = arith.constant 9.99999974E-6 : f32
    %16 = vector.broadcast %cst_9 : f32 to vector<4x1xf32>
    %17 = arith.addf %15, %16 : vector<4x1xf32>
    %18 = tpu.reciprocal %17 : vector<4x1xf32> -> vector<4x1xf32>
    %19 = arith.mulf %18, %2 : vector<4x1xf32>
    %20 = vector.broadcast %19 : vector<4x1xf32> to vector<4x256xf32>
    %21 = arith.mulf %9, %20 : vector<4x256xf32>
    %22 = vector.broadcast %3 : vector<4x1xf32> to vector<4x256xf32>
    %23 = arith.addf %21, %22 : vector<4x256xf32>
    %cst_10 = arith.constant 0.000000e+00 : f32
    %24 = vector.broadcast %cst_10 : f32 to vector<4x256xf32>
    %25 = arith.cmpf oge, %23, %24 : vector<4x256xf32>
    %cst_11 = arith.constant 2.000000e-01 : f32
    %26 = vector.broadcast %cst_11 : f32 to vector<4x256xf32>
    %27 = arith.mulf %26, %23 : vector<4x256xf32>
    %28 = arith.select %25, %23, %27 : vector<4x256xi1>, vector<4x256xf32>
    %c0_12 = arith.constant 0 : index
    %c0_13 = arith.constant 0 : index
    %c0_14 = arith.constant 0 : index
    %29 = vector.load %arg4[%c0_12, %c0_13, %c0_14] : memref<1x4x256xf32, #tpu.memory_space<vmem>>, vector<1x4x256xf32>
    %30 = vector.shape_cast %29 : vector<1x4x256xf32> to vector<4x256xf32>
    %31 = vector.shape_cast %28 : vector<4x256xf32> to vector<1x4x256xf32>
    tpu.vector_store %arg4[%c0_12, %c0_13, %c0_14], %31 {strides = array<i32>} : memref<1x4x256xf32, #tpu.memory_space<vmem>>, vector<1x4x256xf32>,
    return
  }
  func.func @transform_0(%arg0: i32) -> (i32, i32, i32) {
    %c0_i32 = arith.constant 0 : i32
    %c0_i32_0 = arith.constant 0 : i32
    %c0_i32_1 = arith.constant 0 : i32
    return %arg0, %c0_i32, %c0_i32_0 : i32, i32, i32
  }
  func.func @transform_1(%arg0: i32) -> (i32, i32) {
    %c0_i32 = arith.constant 0 : i32
    %c0_i32_0 = arith.constant 0 : i32
    %c0_i32_1 = arith.constant 0 : i32
    return %c0_i32, %c0_i32_0 : i32, i32
  }
  func.func @transform_2(%arg0: i32) -> (i32, i32) {
    %c0_i32 = arith.constant 0 : i32
    %c0_i32_0 = arith.constant 0 : i32
    %c0_i32_1 = arith.constant 0 : i32
    return %c0_i32, %c0_i32_0 : i32, i32
  }
  func.func @transform_3(%arg0: i32) -> (i32, i32, i32) {
    %c0_i32 = arith.constant 0 : i32
    %c0_i32_0 = arith.constant 0 : i32
    %c0_i32_1 = arith.constant 0 : i32
    return %arg0, %c0_i32, %c0_i32_0 : i32, i32, i32
  }
}

module attributes {stable_mosaic.version = 11 : i64} {
  func.func @conv_pool_in_lrelu_kernel(%arg0: i32, %arg1: memref<1x36x64xf32, #tpu.memory_space<vmem>>, %arg2: memref<4x36xf32, #tpu.memory_space<vmem>>, %arg3: memref<4x1xf32, #tpu.memory_space<vmem>>, %arg4: memref<4x1xf32, #tpu.memory_space<vmem>>, %arg5: memref<4x1xf32, #tpu.memory_space<vmem>>, %arg6: memref<1x4x64xf32, #tpu.memory_space<vmem>>) attributes {dimension_semantics = [#tpu.dimension_semantics<parallel>], iteration_bounds = array<i64: 2>, scalar_prefetch = 0 : i64, scratch_operands = 0 : i64, tpu.core_type = #tpu.core_type<tc>, window_params = [{transform_indices = @transform_0, window_bounds = array<i64: 1, 36, 64>}, {pipeline_mode = #tpu.pipeline_mode<synchronous>, transform_indices = @transform_1, window_bounds = array<i64: 4, 36>}, {pipeline_mode = #tpu.pipeline_mode<synchronous>, transform_indices = @transform_2, window_bounds = array<i64: 4, 1>}, {pipeline_mode = #tpu.pipeline_mode<synchronous>, transform_indices = @transform_3, window_bounds = array<i64: 4, 1>}, {pipeline_mode = #tpu.pipeline_mode<synchronous>, transform_indices = @transform_4, window_bounds = array<i64: 4, 1>}, {transform_indices = @transform_5, window_bounds = array<i64: 1, 4, 64>}]} {
    %c0 = arith.constant 0 : index
    %c0_0 = arith.constant 0 : index
    %0 = vector.load %arg2[%c0, %c0_0] : memref<4x36xf32, #tpu.memory_space<vmem>>, vector<4x36xf32>
    %c0_1 = arith.constant 0 : index
    %c0_2 = arith.constant 0 : index
    %c0_3 = arith.constant 0 : index
    %1 = vector.load %arg1[%c0_1, %c0_2, %c0_3] : memref<1x36x64xf32, #tpu.memory_space<vmem>>, vector<1x36x64xf32>
    %2 = vector.shape_cast %1 : vector<1x36x64xf32> to vector<36x64xf32>
    %cst = arith.constant dense<0.000000e+00> : vector<4x64xf32>
    %3 = tpu.matmul %0, %2, %cst {dimension_numbers = #tpu.dot_dimension_numbers<[1], [0], [0], [1], [0, 0, 1, 1], [], []>} : vector<4x36xf32>, vector<36x64xf32>, vector<4x64xf32> -> vector<4x64xf32>
    %c0_4 = arith.constant 0 : index
    %c0_5 = arith.constant 0 : index
    %4 = vector.load %arg3[%c0_4, %c0_5] : memref<4x1xf32, #tpu.memory_space<vmem>>, vector<4x1xf32>
    %5 = vector.broadcast %4 : vector<4x1xf32> to vector<4x64xf32>
    %6 = arith.addf %3, %5 : vector<4x64xf32>
    %c0_6 = arith.constant 0 : index
    %c0_7 = arith.constant 0 : index
    %7 = vector.load %arg4[%c0_6, %c0_7] : memref<4x1xf32, #tpu.memory_space<vmem>>, vector<4x1xf32>
    %c0_8 = arith.constant 0 : index
    %c0_9 = arith.constant 0 : index
    %8 = vector.load %arg5[%c0_8, %c0_9] : memref<4x1xf32, #tpu.memory_space<vmem>>, vector<4x1xf32>
    %cst_10 = arith.constant dense<0.000000e+00> : vector<4xf32>
    %9 = vector.multi_reduction <add>, %6, %cst_10 [1] : vector<4x64xf32> to vector<4xf32>
    %10 = vector.shape_cast %9 : vector<4xf32> to vector<4x1xf32>
    %cst_11 = arith.constant 6.400000e+01 : f32
    %11 = vector.broadcast %cst_11 : f32 to vector<4x1xf32>
    %12 = arith.divf %10, %11 : vector<4x1xf32>
    %13 = vector.broadcast %12 : vector<4x1xf32> to vector<4x64xf32>
    %14 = arith.subf %6, %13 : vector<4x64xf32>
    %15 = arith.mulf %14, %14 : vector<4x64xf32>
    %cst_12 = arith.constant dense<0.000000e+00> : vector<4xf32>
    %16 = vector.multi_reduction <add>, %15, %cst_12 [1] : vector<4x64xf32> to vector<4xf32>
    %17 = vector.shape_cast %16 : vector<4xf32> to vector<4x1xf32>
    %cst_13 = arith.constant 0.0158730168 : f32
    %18 = vector.broadcast %cst_13 : f32 to vector<4x1xf32>
    %19 = arith.mulf %17, %18 : vector<4x1xf32>
    %20 = math.sqrt %19 : vector<4x1xf32>
    %cst_14 = arith.constant 9.99999974E-6 : f32
    %21 = vector.broadcast %cst_14 : f32 to vector<4x1xf32>
    %22 = arith.addf %20, %21 : vector<4x1xf32>
    %23 = tpu.reciprocal %22 : vector<4x1xf32> -> vector<4x1xf32>
    %24 = arith.mulf %23, %7 : vector<4x1xf32>
    %25 = vector.broadcast %24 : vector<4x1xf32> to vector<4x64xf32>
    %26 = arith.mulf %14, %25 : vector<4x64xf32>
    %27 = vector.broadcast %8 : vector<4x1xf32> to vector<4x64xf32>
    %28 = arith.addf %26, %27 : vector<4x64xf32>
    %cst_15 = arith.constant 0.000000e+00 : f32
    %29 = vector.broadcast %cst_15 : f32 to vector<4x64xf32>
    %30 = arith.cmpf oge, %28, %29 : vector<4x64xf32>
    %cst_16 = arith.constant 2.000000e-01 : f32
    %31 = vector.broadcast %cst_16 : f32 to vector<4x64xf32>
    %32 = arith.mulf %31, %28 : vector<4x64xf32>
    %33 = arith.select %30, %28, %32 : vector<4x64xi1>, vector<4x64xf32>
    %c0_17 = arith.constant 0 : index
    %c0_18 = arith.constant 0 : index
    %c0_19 = arith.constant 0 : index
    %34 = vector.load %arg6[%c0_17, %c0_18, %c0_19] : memref<1x4x64xf32, #tpu.memory_space<vmem>>, vector<1x4x64xf32>
    %35 = vector.shape_cast %34 : vector<1x4x64xf32> to vector<4x64xf32>
    %36 = vector.shape_cast %33 : vector<4x64xf32> to vector<1x4x64xf32>
    tpu.vector_store %arg6[%c0_17, %c0_18, %c0_19], %36 {strides = array<i32>} : memref<1x4x64xf32, #tpu.memory_space<vmem>>, vector<1x4x64xf32>,
    return
  }
  func.func @transform_0(%arg0: i32) -> (i32, i32, i32) {
    %c0_i32 = arith.constant 0 : i32
    %c0_i32_0 = arith.constant 0 : i32
    %c0_i32_1 = arith.constant 0 : i32
    return %arg0, %c0_i32, %c0_i32_0 : i32, i32, i32
  }
  func.func @transform_1(%arg0: i32) -> (i32, i32) {
    %c0_i32 = arith.constant 0 : i32
    %c0_i32_0 = arith.constant 0 : i32
    %c0_i32_1 = arith.constant 0 : i32
    return %c0_i32, %c0_i32_0 : i32, i32
  }
  func.func @transform_2(%arg0: i32) -> (i32, i32) {
    %c0_i32 = arith.constant 0 : i32
    %c0_i32_0 = arith.constant 0 : i32
    %c0_i32_1 = arith.constant 0 : i32
    return %c0_i32, %c0_i32_0 : i32, i32
  }
  func.func @transform_3(%arg0: i32) -> (i32, i32) {
    %c0_i32 = arith.constant 0 : i32
    %c0_i32_0 = arith.constant 0 : i32
    %c0_i32_1 = arith.constant 0 : i32
    return %c0_i32, %c0_i32_0 : i32, i32
  }
  func.func @transform_4(%arg0: i32) -> (i32, i32) {
    %c0_i32 = arith.constant 0 : i32
    %c0_i32_0 = arith.constant 0 : i32
    %c0_i32_1 = arith.constant 0 : i32
    return %c0_i32, %c0_i32_0 : i32, i32
  }
  func.func @transform_5(%arg0: i32) -> (i32, i32, i32) {
    %c0_i32 = arith.constant 0 : i32
    %c0_i32_0 = arith.constant 0 : i32
    %c0_i32_1 = arith.constant 0 : i32
    return %arg0, %c0_i32, %c0_i32_0 : i32, i32, i32
  }
}

module attributes {stable_mosaic.version = 11 : i64} {
  func.func @conv_residual_kernel(%arg0: i32, %arg1: memref<1x40x64xf32, #tpu.memory_space<vmem>>, %arg2: memref<8x40xf32, #tpu.memory_space<vmem>>, %arg3: memref<8x1xf32, #tpu.memory_space<vmem>>, %arg4: memref<1x8x64xf32, #tpu.memory_space<vmem>>) attributes {dimension_semantics = [#tpu.dimension_semantics<parallel>], iteration_bounds = array<i64: 2>, scalar_prefetch = 0 : i64, scratch_operands = 0 : i64, tpu.core_type = #tpu.core_type<tc>, window_params = [{transform_indices = @transform_0, window_bounds = array<i64: 1, 40, 64>}, {pipeline_mode = #tpu.pipeline_mode<synchronous>, transform_indices = @transform_1, window_bounds = array<i64: 8, 40>}, {pipeline_mode = #tpu.pipeline_mode<synchronous>, transform_indices = @transform_2, window_bounds = array<i64: 8, 1>}, {transform_indices = @transform_3, window_bounds = array<i64: 1, 8, 64>}]} {
    %c0 = arith.constant 0 : index
    %c0_0 = arith.constant 0 : index
    %0 = vector.load %arg2[%c0, %c0_0] : memref<8x40xf32, #tpu.memory_space<vmem>>, vector<8x40xf32>
    %c0_1 = arith.constant 0 : index
    %c0_2 = arith.constant 0 : index
    %c0_3 = arith.constant 0 : index
    %1 = vector.load %arg1[%c0_1, %c0_2, %c0_3] : memref<1x40x64xf32, #tpu.memory_space<vmem>>, vector<1x40x64xf32>
    %2 = vector.shape_cast %1 : vector<1x40x64xf32> to vector<40x64xf32>
    %cst = arith.constant dense<0.000000e+00> : vector<8x64xf32>
    %3 = tpu.matmul %0, %2, %cst {dimension_numbers = #tpu.dot_dimension_numbers<[1], [0], [0], [1], [0, 0, 1, 1], [], []>} : vector<8x40xf32>, vector<40x64xf32>, vector<8x64xf32> -> vector<8x64xf32>
    %c0_4 = arith.constant 0 : index
    %c0_5 = arith.constant 0 : index
    %4 = vector.load %arg3[%c0_4, %c0_5] : memref<8x1xf32, #tpu.memory_space<vmem>>, vector<8x1xf32>
    %5 = vector.broadcast %4 : vector<8x1xf32> to vector<8x64xf32>
    %6 = arith.addf %3, %5 : vector<8x64xf32>
    %c0_6 = arith.constant 0 : index
    %c0_7 = arith.constant 0 : index
    %c0_8 = arith.constant 0 : index
    %7 = vector.load %arg4[%c0_6, %c0_7, %c0_8] : memref<1x8x64xf32, #tpu.memory_space<vmem>>, vector<1x8x64xf32>
    %8 = vector.shape_cast %7 : vector<1x8x64xf32> to vector<8x64xf32>
    %9 = vector.shape_cast %6 : vector<8x64xf32> to vector<1x8x64xf32>
    tpu.vector_store %arg4[%c0_6, %c0_7, %c0_8], %9 {strides = array<i32>} : memref<1x8x64xf32, #tpu.memory_space<vmem>>, vector<1x8x64xf32>,
    return
  }
  func.func @transform_0(%arg0: i32) -> (i32, i32, i32) {
    %c0_i32 = arith.constant 0 : i32
    %c0_i32_0 = arith.constant 0 : i32
    %c0_i32_1 = arith.constant 0 : i32
    return %arg0, %c0_i32, %c0_i32_0 : i32, i32, i32
  }
  func.func @transform_1(%arg0: i32) -> (i32, i32) {
    %c0_i32 = arith.constant 0 : i32
    %c0_i32_0 = arith.constant 0 : i32
    %c0_i32_1 = arith.constant 0 : i32
    return %c0_i32, %c0_i32_0 : i32, i32
  }
  func.func @transform_2(%arg0: i32) -> (i32, i32) {
    %c0_i32 = arith.constant 0 : i32
    %c0_i32_0 = arith.constant 0 : i32
    %c0_i32_1 = arith.constant 0 : i32
    return %c0_i32, %c0_i32_0 : i32, i32
  }
  func.func @transform_3(%arg0: i32) -> (i32, i32, i32) {
    %c0_i32 = arith.constant 0 : i32
    %c0_i32_0 = arith.constant 0 : i32
    %c0_i32_1 = arith.constant 0 : i32
    return %arg0, %c0_i32, %c0_i32_0 : i32, i32, i32
  }
}

</mosaic_0001>

<bundles_post_ra>
// kernel: down_block_in.3
= control target key start
LH: loop header
LB: loop body
LE: loop exit
PB: predicated region body
PF: predicated region fallthrough
CT: control target
= control target key end

     0   :  { %s360_s12 = smov 0   ;;  %s394_s0 = inlined_call_operand.vmem [shape: f32[2,4,256], index: 0, kind: input, shape index: {}]   ;;  %s395_s1 = inlined_call_operand.vmem [shape: f32[4,1], index: 1, kind: input, shape index: {}]   ;;  %s396_s2 = inlined_call_operand.vmem [shape: f32[4,1], index: 2, kind: input, shape index: {}]   ;;  %s397_s3 = inlined_call_operand.vmem [shape: f32[2,4,256], index: 3, kind: output, shape index: {}]  }
   0x1 LB: > { %s300_s13 = sadd.s32 4294967295, %s336_s12   ;;  %p304_p0 = scmp.ge.s32.totalorder %s336_s12, 1  ;;  %s336_s12 = sphi %s360_s12, %s13_s12  }
   0x2   : > { %p137_p1 = scmp.lt.s32.totalorder %s336_s12, 3 }
   0x4   : > { %p138_p2 = pnand %p304_p0, %p137_p1 }
   0x5   : > { %p161_p3 = scmp.lt.s32.totalorder (!%p138_p2), %s300_s13, 1  ;;  %vm177_vm0 = vcmask (!%p138_p2), 1043456   ;;  %v338_v5 = vmov (!%p138_p2), 839922192   ;;  %v189_v7 = vlaneseq (!%p138_p2)  ;;  %v339_v20 = vmov (!%p138_p2), 0  }
   0x6   : > { %141 = sbr.rel (%p138_p2) target bundleno = 491 (0x1eb), region = 32  ;;  %v187_v6 = vunpack.c.l.s4 (!%p138_p2), %v338_v5  ;;  %323 = vset.pattern.permute.xlu1 (!%p138_p2), %v339_v20  ;;  %324 = vset.pattern.permute.xlu0 (!%p138_p2), %v339_v20  ;;  %v172_v29 = vld [vmem:[%s395_s1] sm:$0xf] (!%p138_p2) }
   0x7   : > { %v190_v9 = vshrl.u32 (!%p138_p2), %v189_v7, 7  ;;  %v173_v32 = vld [vmem:[%s396_s2] sm:$0xf] (!%p138_p2) }
   0x8   : > { %v188_v8 = vunpack.c.0.s8 (!%p138_p2), %v187_v6 }
   0xa   : > { %v191_v10 = vsub.s32 (!%p138_p2), %v188_v8, %v190_v9 }
   0xd   : > { %s399_s13 = smov (!%p161_p3, %s300_s13), 1 }
   0xe   : > { %s311_s14 = sshll.u32 %s399_s13, 3 }
   0xf   : > { %s165_s17 = scalar_lea.vmem %s394_s0, %s311_s14  ;;  %s170_s24 = scalar_lea.vmem %s397_s3, %s311_s14 }
  0x10   : > { %v171_v0 = vld [vmem:[%s165_s17] sm:$0xff] }
  0x11   : > { %v175_v1 = vcombine.high %v171_v0, %v171_v0  ;;  %v178_v2 = vsel %vm177_vm0, %v171_v0, 0.0 }
  0x13   : > { %v179_v3 = vsel %vm177_vm0, %v175_v1, 0.0 }
  0x14   : > { %v180_v4 = vadd.f32 %v179_v3, %v178_v2 }
  0x16   : > { %181 = vadd.xlane.f32.xlu0 %v180_v4 }
  0xa3   : > { %v182_v11 = vpop.xlane.xlu0 %181 }
  0xa4   : > { %v184_v12 = vmul.f32 0.00390625, %v182_v11 }
  0xa6   : > { %v192_v13 = vrot.slane %v184_v12, %v191_v10 }
  0xa8   : > { %v194_v14 = vsub.f32 %v171_v0, %v192_v13 }
  0xaa   : > { %v195_v15 = vmul.f32 %v194_v14, %v194_v14 }
  0xac   : > { %v197_v16 = vcombine.high %v195_v15, %v195_v15  ;;  %v199_v17 = vsel %vm177_vm0, %v195_v15, 0.0 }
  0xae   : > { %v200_v18 = vsel %vm177_vm0, %v197_v16, 0.0 }
  0xaf   : > { %v201_v19 = vadd.f32 %v200_v18, %v199_v17 }
  0xb1   : > { %202 = vadd.xlane.f32.xlu0 %v201_v19 }
 0x13e   : > { %v203_v21 = vpop.xlane.xlu0 %202 }
 0x13f   : > { %v204_v22 = vmul.f32 0.003921569, %v203_v21 }
 0x141   : > { %326 = vrsqrt.f32 %v204_v22  ;;  %vm207_vm1 = vcmp.eq.f32.partialorder %v204_v22, inf  ;;  %v210_v25 = vand.u32 2147483648, %v204_v22  ;;  %vm209_vm2 = vcmp.eq.f32.partialorder %v204_v22, 0.0 }
 0x14b   : > { %v327_v23 = vpop.eup %326 }
 0x14c   : > { %v206_v24 = vmul.f32 %v327_v23, %v204_v22 }
 0x14e   : > { %v208_v26 = vsel %vm207_vm1, %v204_v22, %v206_v24 }
 0x14f   : > { %v211_v27 = vsel %vm209_vm2, %v210_v25, %v208_v26 }
 0x150   : > { %v212_v28 = vadd.f32 1e-05, %v211_v27 }
 0x152   : > { %328 = vrcp.f32 %v212_v28 }
 0x15c   : > { %v329_v30 = vpop.eup %328 }
 0x15d   : > { %v214_v31 = vmul.f32 %v329_v30, %v172_v29 }
 0x15f   : > { %217 = vperm.xlu1 %323, %v214_v31  }
 0x163   : > { %230 = vperm.xlu1 %323, %v173_v32  }
 0x1de   : > { %v218_v33 = vpop.permute.xlu1 %217 }
 0x1df   : > { %v225_v34 = vrot.slane %v218_v33, %v191_v10 }
 0x1e1   : > { %v227_v36 = vmul.f32 %v225_v34, %v194_v14 }
 0x1e2   : > { %v231_v35 = vpop.permute.xlu1 %230 }
 0x1e3   : > { %v238_v37 = vrot.slane %v231_v35, %v191_v10 }
 0x1e5   : > { %v240_v38 = vadd.f32 %v238_v37, %v227_v36 }
 0x1e7   : > { %vm241_vm3 = vcmp.ge.f32.partialorder %v240_v38, 0.0  ;;  %v242_v39 = vmul.f32 0.2, %v240_v38 }
 0x1e9   : > { %v243_v40 = vsel %vm241_vm3, %v240_v38, %v242_v39 }
 0x1ea   : > { %244 = vst [vmem:[%s170_s24] sm:$0xff] %v243_v40 }
 0x1eb PF: > { %s13_s12 = sadd.s32 1, %s336_s12  }
 0x1ec   : > { %p10_p4 = scmp.ge.s32.totalorder %s13_s12, 4  }
 0x1ee   :  { %12 = sbr.rel (!%p10_p4) target bundleno = 1 (0x1), region = 62 }

// kernel: down_block_in.4
= control target key start
LH: loop header
LB: loop body
LE: loop exit
PB: predicated region body
PF: predicated region fallthrough
CT: control target
= control target key end

     0   :  { %s503_s18 = smov 0   ;;  %s539_s0 = inlined_call_operand.vmem [shape: f32[2,36,64], index: 0, kind: input, shape index: {}]   ;;  %s540_s1 = inlined_call_operand.vmem [shape: f32[4,36], index: 1, kind: input, shape index: {}]   ;;  %s541_s2 = inlined_call_operand.vmem [shape: f32[4,1], index: 2, kind: input, shape index: {}]   ;;  %s542_s3 = inlined_call_operand.vmem [shape: f32[4,1], index: 3, kind: input, shape index: {}]   ;;  %s543_s4 = inlined_call_operand.vmem [shape: f32[4,1], index: 4, kind: input, shape index: {}]   ;;  %s544_s5 = inlined_call_operand.vmem [shape: f32[2,4,64], index: 5, kind: output, shape index: {}]  }
   0x1 LB: > { %s406_s19 = sadd.s32 4294967295, %s467_s18   ;;  %p410_p0 = scmp.ge.s32.totalorder %s467_s18, 1  ;;  %s467_s18 = sphi %s503_s18, %s15_s18  }
   0x2   : > { %p187_p1 = scmp.lt.s32.totalorder %s467_s18, 3 }
   0x4   : > { %p188_p2 = pnand %p410_p0, %p187_p1 }
   0x5   : > { %p214_p3 = scmp.lt.s32.totalorder (!%p188_p2), %s406_s19, 1  ;;  %v469_v0 = vmov (!%p188_p2), 0.0|0.0   ;;  %vm470_vm0 = vmmov (!%p188_p2), 0   ;;  %v471_v1 = vmov (!%p188_p2), 0.0   ;;  %v229_v2 = vld [vmem:[%s541_s2] sm:$0xf] (!%p188_p2) }
   0x6   : > { %191 = sbr.rel (%p188_p2) target bundleno = 705 (0x2c1), region = 40  ;;  %436 = vmatprep.subr.bf16.mxu0 (!%p188_p2), %v469_v0  ;;  %433 = vmatprep.mubr.msk.f32.mxu0 (!%p188_p2), %vm470_vm0, %v471_v1  ;;  %v472_v3 = vmov (!%p188_p2), 0   ;;  %vm239_vm1 = vcmask (!%p188_p2), 1043456   ;;  %v223_v11 = vld [vmem:[%s540_s1] sm:$0xf] (!%p188_p2)  ;;  %vm235_vm2 = vcmask (!%p188_p2), 293888  }
   0x7   : > { %455 = vset.pattern.permute.xlu0 (!%p188_p2), %v472_v3  ;;  %456 = vset.pattern.permute.xlu1 (!%p188_p2), %v472_v3  ;;  %vm315_vm3 = vcmask (!%p188_p2), 519168   ;;  %v313_v30 = vld [vmem:[%s542_s3] sm:$0xf] (!%p188_p2) }
   0x8   : > { %232 = vperm.xlu0 (!%p188_p2), %455, %v229_v2   ;;  %v314_v33 = vld [vmem:[%s543_s4] sm:$0xf] (!%p188_p2) }
   0xd   : > { %s546_s19 = smov (!%p214_p3, %s406_s19), 1 }
   0xe   : > { %s442_s22 = smul.u32 40, %s546_s19  ;;  %s412_s7 = sshll.u32 %s546_s19, 2 }
   0xf   : > { %s222_s10 = scalar_lea.vmem %s544_s5, %s412_s7 }
  0x10   : > { %s218_s25 = scalar_lea.vmem %s539_s0, %s442_s22 }
  0x11   : > { %v224_v4 = vld [vmem:[%s218_s25] sm:$0xff]  ;;  %v225_v5 = vld [vmem:[%s218_s25 + $0x8] sm:$0xff]  ;;  %v226_v6 = vld [vmem:[%s218_s25 + $0x10] sm:$0xff] }
  0x12   : > { %v437_v7 = vpack.c.bf16 %v225_v5, %v224_v4  ;;  %v227_v8 = vld [vmem:[%s218_s25 + $0x18] sm:$0xff]  ;;  %v228_v10 = vld [vmem:[%s218_s25 + $0x20] sm:$0xf] }
  0x13   : > { %v440_v9 = vpack.c.bf16 %v227_v8, %v226_v6 }
  0x14   : > { %438 = vmatpush3.bf16.msra.mxu0 %v437_v7 }
  0x15   : > { %439 = vmatprep.subr.bf16.mxu0 %v469_v0 }
  0x18   : > { %441 = vmatpush3.bf16.msra.mxu0 %v440_v9 }
  0x19   : > { %431 = vmatprep.subr.mxu0 %v471_v1 }
  0x1c   : > { %432 = vmatpush3.msk.msra.mxu0 %vm239_vm1, %v228_v10 }
  0x1d   : > { %434 = vmatmul.mubr.msk.f32.vlgmr.msra.gmra.mrb[0].mxu0 %vm235_vm2, %v223_v11 }
  0x87   : > { %v233_v12 = vpop.permute.xlu0 %232 }
  0xf0   : > { %v309_v13 = vpop.f32.mrb[0].mxu0 }
  0xf1   : > { %v310_v14 = vadd.f32 %v309_v13, %v233_v12  ;;  %v435_v15 = vpop.f32.mrb[1].mxu0 }
  0xf3   : > { %v316_v16 = vsel %vm315_vm3, %v310_v14, 0.0 }
  0xf4   : > { %317 = vadd.xlane.f32.xlu0 %v316_v16 }
 0x181   : > { %v318_v17 = vpop.xlane.xlu0 %317 }
 0x182   : > { %v320_v18 = vmul.f32 0.015625, %v318_v17 }
 0x184   : > { %v321_v19 = vsub.f32 %v310_v14, %v320_v18 }
 0x186   : > { %v322_v20 = vmul.f32 %v321_v19, %v321_v19 }
 0x188   : > { %v323_v21 = vsel %vm315_vm3, %v322_v20, 0.0 }
 0x189   : > { %324 = vadd.xlane.f32.xlu1 %v323_v21 }
 0x216   : > { %v325_v22 = vpop.xlane.xlu1 %324 }
 0x217   : > { %v326_v23 = vmul.f32 0.015873017, %v325_v22 }
 0x219   : > { %457 = vrsqrt.f32 %v326_v23  ;;  %vm329_vm4 = vcmp.eq.f32.partialorder %v326_v23, inf  ;;  %v332_v26 = vand.u32 2147483648, %v326_v23  ;;  %vm331_vm5 = vcmp.eq.f32.partialorder %v326_v23, 0.0 }
 0x223   : > { %v458_v24 = vpop.eup %457 }
 0x224   : > { %v328_v25 = vmul.f32 %v458_v24, %v326_v23 }
 0x226   : > { %v330_v27 = vsel %vm329_vm4, %v326_v23, %v328_v25 }
 0x227   : > { %v333_v28 = vsel %vm331_vm5, %v332_v26, %v330_v27 }
 0x228   : > { %v334_v29 = vadd.f32 1e-05, %v333_v28 }
 0x22a   : > { %459 = vrcp.f32 %v334_v29 }
 0x234   : > { %v460_v31 = vpop.eup %459 }
 0x235   : > { %v336_v32 = vmul.f32 %v460_v31, %v313_v30 }
 0x237   : > { %339 = vperm.xlu1 %456, %v336_v32  }
 0x23b   : > { %345 = vperm.xlu1 %456, %v314_v33  }
 0x2b6   : > { %v340_v34 = vpop.permute.xlu1 %339 }
 0x2b7   : > { %v342_v35 = vmul.f32 %v340_v34, %v321_v19 }
 0x2ba   : > { %v346_v36 = vpop.permute.xlu1 %345 }
 0x2bb   : > { %v348_v37 = vadd.f32 %v346_v36, %v342_v35 }
 0x2bd   : > { %vm349_vm6 = vcmp.ge.f32.partialorder %v348_v37, 0.0  ;;  %v350_v38 = vmul.f32 0.2, %v348_v37 }
 0x2bf   : > { %v351_v39 = vsel %vm349_vm6, %v348_v37, %v350_v38 }
 0x2c0   : > { %352 = vst.msk [vmem:[%s222_s10] sm:$0xf] %vm315_vm3, %v351_v39 }
 0x2c1 PF: > { %s15_s18 = sadd.s32 1, %s467_s18  }
 0x2c2   : > { %p12_p4 = scmp.ge.s32.totalorder %s15_s18, 4  }
 0x2c4   :  { %14 = sbr.rel (!%p12_p4) target bundleno = 1 (0x1), region = 70 }

// kernel: down_block_in.5
= control target key start
LH: loop header
LB: loop body
LE: loop exit
PB: predicated region body
PF: predicated region fallthrough
CT: control target
= control target key end

     0   :  { %s391_s12 = smov 0   ;;  %s414_s0 = inlined_call_operand.vmem [shape: f32[2,40,64], index: 0, kind: input, shape index: {}]   ;;  %s415_s1 = inlined_call_operand.vmem [shape: f32[8,40], index: 1, kind: input, shape index: {}]   ;;  %s416_s2 = inlined_call_operand.vmem [shape: f32[8,1], index: 2, kind: input, shape index: {}]   ;;  %s417_s3 = inlined_call_operand.vmem [shape: f32[2,8,64], index: 3, kind: output, shape index: {}]  }
   0x1 LB: > { %s310_s13 = sadd.s32 4294967295, %s365_s12   ;;  %p314_p0 = scmp.ge.s32.totalorder %s365_s12, 1  ;;  %s365_s12 = sphi %s391_s12, %s13_s12  }
   0x2   : > { %p137_p1 = scmp.lt.s32.totalorder %s365_s12, 3 }
   0x4   : > { %p138_p2 = pnand %p314_p0, %p137_p1 }
   0x5   : > { %p160_p3 = scmp.lt.s32.totalorder (!%p138_p2), %s310_s13, 1  ;;  %v367_v0 = vmov (!%p138_p2), 0.0|0.0   ;;  %vm368_vm0 = vmmov (!%p138_p2), 0   ;;  %v369_v1 = vmov (!%p138_p2), 0.0   ;;  %v175_v2 = vld [vmem:[%s416_s2] sm:$0xff] (!%p138_p2)  ;;  %v370_v3 = vmov (!%p138_p2), 0  }
   0x6   : > { %141 = sbr.rel (%p138_p2) target bundleno = 244 (0xf4), region = 32  ;;  %339 = vmatprep.subr.bf16.mxu0 (!%p138_p2), %v367_v0  ;;  %336 = vmatprep.mubr.msk.f32.mxu0 (!%p138_p2), %vm368_vm0, %v369_v1  ;;  %v169_v11 = vld [vmem:[%s415_s1] sm:$0xff] (!%p138_p2)  ;;  %vm181_vm1 = vcmask (!%p138_p2), 326656   ;;  %vm255_vm2 = vcmask (!%p138_p2), 523264  }
   0x7   : > { %358 = vset.pattern.permute.xlu0 (!%p138_p2), %v370_v3 }
   0x8   : > { %178 = vperm.xlu0 (!%p138_p2), %358, %v175_v2  }
   0xd   : > { %s419_s13 = smov (!%p160_p3, %s310_s13), 1 }
   0xe   : > { %s345_s16 = smul.u32 40, %s419_s13  ;;  %s316_s22 = sshll.u32 %s419_s13, 3 }
   0xf   : > { %s168_s25 = scalar_lea.vmem %s417_s3, %s316_s22 }
  0x10   : > { %s164_s19 = scalar_lea.vmem %s414_s0, %s345_s16 }
  0x11   : > { %v170_v4 = vld [vmem:[%s164_s19] sm:$0xff]  ;;  %v171_v5 = vld [vmem:[%s164_s19 + $0x8] sm:$0xff]  ;;  %v172_v6 = vld [vmem:[%s164_s19 + $0x10] sm:$0xff] }
  0x12   : > { %v340_v7 = vpack.c.bf16 %v171_v5, %v170_v4  ;;  %v173_v8 = vld [vmem:[%s164_s19 + $0x18] sm:$0xff]  ;;  %v174_v10 = vld [vmem:[%s164_s19 + $0x20] sm:$0xff] }
  0x13   : > { %v343_v9 = vpack.c.bf16 %v173_v8, %v172_v6 }
  0x14   : > { %341 = vmatpush3.bf16.msra.mxu0 %v340_v7 }
  0x15   : > { %342 = vmatprep.subr.bf16.mxu0 %v367_v0 }
  0x18   : > { %344 = vmatpush3.bf16.msra.mxu0 %v343_v9 }
  0x19   : > { %334 = vmatprep.subr.mxu0 %v369_v1 }
  0x1c   : > { %335 = vmatpush3.msra.mxu0 %v174_v10 }
  0x1d   : > { %337 = vmatmul.mubr.msk.f32.vlgmr.msra.gmra.mrb[0].mxu0 %vm181_vm1, %v169_v11 }
  0x87   : > { %v179_v12 = vpop.permute.xlu0 %178 }
  0xf0   : > { %v251_v13 = vpop.f32.mrb[0].mxu0 }
  0xf1   : > { %v252_v14 = vadd.f32 %v251_v13, %v179_v12  ;;  %v338_v15 = vpop.f32.mrb[1].mxu0 }
  0xf3   : > { %256 = vst.msk [vmem:[%s168_s25] sm:$0xff] %vm255_vm2, %v252_v14 }
  0xf4 PF: > { %s13_s12 = sadd.s32 1, %s365_s12  }
  0xf5   : > { %p10_p4 = scmp.ge.s32.totalorder %s13_s12, 4  }
  0xf7   :  { %12 = sbr.rel (!%p10_p4) target bundleno = 1 (0x1), region = 62 }

</bundles_post_ra>
